<compile_context>
chip_gen: v7x
topology: tpu7x:2x2x1
jax: 0.10.0
libtpu: 0.0.40
codegen_flags: <defaults>
</compile_context>

<pallas_src>
import jax
import jax.numpy as jnp
from jax.experimental import pallas as pl
from jax.experimental.pallas import tpu as pltpu

# ---------------- shapes consistent with the module ----------------
N = 2              # batch
NPAD = 8           # batch rows padded to a full sublane tile
CIN = 3            # image channels
IMG = 16           # spatial size
CFEAT = 32         # backbone.num_features (stem proxy output channels)
EMB = 16           # cfg.MODEL.BACKBONE.EMBEDDINGS_DIM
HIDDEN = 256       # fc_block hidden width
NUM_CLASSES = 4
LANE_OUT = 128     # lane-dense (padded) output width
GEM_P = 3.0
GEM_EPS = 1e-6
BN_EPS = 1e-5

KH = KW = 3
STRIDE = 2
PAD = 1
HO = WO = IMG // STRIDE            # 8
HW = HO * WO                       # 64 spatial positions / image
KRAW = KH * KW * CIN               # 27
KPAD = 32                          # padded contraction dim (row 27 = bias lane)
CH = NUM_CLASSES * HIDDEN          # 1024

VMEM_SPEC = pl.BlockSpec(memory_space=pltpu.MemorySpace.VMEM)


# ---------------- fused Pallas kernel ----------------
def fused_effnet2_kernel(col_ref, avg_ref, stem_w_ref, w1_ref, w2_ref,
                         bias_ref, o_ref):
    """One-dispatch forward pass; every intermediate stays in VMEM/vregs.

    col:    (N*HW, KPAD)   bf16 im2col patches; column 27 == 1.0 (bias lane)
    avg:    (NPAD, N*HW)   f32 block-diag spatial-mean operator (rows>=N zero)
    stem_w: (KPAD, CFEAT)  bf16; row 27 carries the stem bias
    w1:     (CFEAT, C*H)   bf16 fused pool-Linear @ head-Linear1 (+BN folds)
    w2:     (C*H, 128)     bf16 block-diagonal per-class Linear2, lane-padded
    bias:   (1, C*H+128)   f32  [b1_fused | b2_padded]
    out:    (NPAD, 128)    f32  logits in [:N, :NUM_CLASSES]
    """
    # ---- stem conv as matmul (bias folded into K lane 27) + SiLU ----
    y = jnp.dot(col_ref[...], stem_w_ref[...],
                preferred_element_type=jnp.float32)       # (N*HW, CFEAT) f32
    feat = y * jax.nn.sigmoid(y)                          # SiLU, f32 on VPU/EUP

    # ---- GeM pool (p=3): clamp, cube on VPU, spatial mean via MXU ----
    x = jnp.maximum(feat, GEM_EPS)
    cubes = x * x * x                                     # VPU, keeps EUP free
    pooled = jnp.dot(avg_ref[...], cubes,
                     preferred_element_type=jnp.float32)  # (NPAD, CFEAT)
    pooled = jnp.maximum(pooled, 1e-30)                   # guard zero pad-rows
    pooled = jnp.exp(jnp.log(pooled) * (1.0 / GEM_P))     # cube root

    # ---- fused pool-Linear + per-class head Linear1 (+BNs) + ReLU ----
    b1 = bias_ref[:, :CH]
    h = jnp.dot(pooled.astype(jnp.bfloat16), w1_ref[...],
                preferred_element_type=jnp.float32) + b1  # (NPAD, C*H)
    h = jnp.maximum(h, 0.0)                               # ReLU

    # ---- block-diagonal per-class Linear2 -> lane-dense logits ----
    b2 = bias_ref[:, CH:]
    o_ref[...] = jnp.dot(h.astype(jnp.bfloat16), w2_ref[...],
                         preferred_element_type=jnp.float32) + b2


# ---------------- parameter init (PyTorch-equivalent raw params) ----------------
def init_params(key):
    ks = jax.random.split(key, 12)

    def rnd(k, shape, scale=0.05):
        return jax.random.normal(k, shape, jnp.float32) * scale

    # conv weight in PyTorch OIHW layout, converted to the patches column
    # layout of lax.conv_general_dilated_patches: K index = c*KH*KW + i*KW + j.
    conv_w = rnd(ks[0], (CFEAT, CIN, KH, KW), 0.1)
    stem_w_col = jnp.transpose(conv_w, (1, 2, 3, 0)).reshape(KRAW, CFEAT)

    return dict(
        stem_w_col=stem_w_col,
        stem_b=rnd(ks[1], (1, CFEAT)),
        pool_w=rnd(ks[2], (CFEAT, EMB)),
        pool_b=rnd(ks[3], (1, EMB)),
        pool_bn_g=1.0 + rnd(ks[4], (1, EMB)),
        pool_bn_b=rnd(ks[5], (1, EMB)),
        pool_bn_rm=rnd(ks[6], (1, EMB)),
        pool_bn_rv=jnp.abs(1.0 + rnd(ks[7], (1, EMB))),
        h_w1=rnd(ks[8], (NUM_CLASSES, EMB, HIDDEN)),
        h_b1=rnd(ks[9], (NUM_CLASSES, HIDDEN)),
        h_bn_g=jnp.ones((NUM_CLASSES, HIDDEN), jnp.float32),
        h_bn_b=jnp.zeros((NUM_CLASSES, HIDDEN), jnp.float32),
        h_bn_rm=jnp.zeros((NUM_CLASSES, HIDDEN), jnp.float32),
        h_bn_rv=jnp.ones((NUM_CLASSES, HIDDEN), jnp.float32),
        h_w2=rnd(ks[10], (NUM_CLASSES, HIDDEN)),
        h_b2=rnd(ks[11], (1, NUM_CLASSES)),
    )


def fold_params(p):
    """One-time setup folds: BNs into Linears, pool-Linear into head-Linear1,
    stem bias into the padded K lane, block-diag/lane-padded second layer,
    sublane-padded spatial-mean operator, bf16 MXU weights."""
    # stem: pad K 27 -> 32; row 27 = bias, rows 28..31 zero
    stem_w = jnp.concatenate(
        [p["stem_w_col"], p["stem_b"],
         jnp.zeros((KPAD - KRAW - 1, CFEAT), jnp.float32)], axis=0)

    # pool: fold BatchNorm1d(EMB) into Linear(CFEAT, EMB)
    s = p["pool_bn_g"] * jax.lax.rsqrt(p["pool_bn_rv"] + BN_EPS)       # (1, EMB)
    pool_w = p["pool_w"] * s
    pool_b = (p["pool_b"] - p["pool_bn_rm"]) * s + p["pool_bn_b"]

    # heads: fold per-class BatchNorm1d(HIDDEN) into Linear(EMB, HIDDEN)
    hs = p["h_bn_g"] * jax.lax.rsqrt(p["h_bn_rv"] + BN_EPS)            # (C, H)
    w1 = p["h_w1"] * hs[:, None, :]                                    # (C, EMB, H)
    b1 = (p["h_b1"] - p["h_bn_rm"]) * hs + p["h_bn_b"]                 # (C, H)
    w1_flat = jnp.transpose(w1, (1, 0, 2)).reshape(EMB, CH)            # (EMB, C*H)
    b1_flat = b1.reshape(1, CH)

    # fold pool Linear into head Linear1 (both affine): (CFEAT, C*H)
    w1_fused = pool_w @ w1_flat
    b1_fused = pool_b @ w1_flat + b1_flat                              # (1, C*H)

    # per-class Linear(256,1) -> block-diagonal (C*H, 128) lane-padded matmul
    w2_bd = jnp.zeros((CH, LANE_OUT), jnp.float32)
    for c in range(NUM_CLASSES):
        w2_bd = w2_bd.at[c * HIDDEN:(c + 1) * HIDDEN, c].set(p["h_w2"][c])
    b2_pad = jnp.zeros((1, LANE_OUT), jnp.float32).at[:, :NUM_CLASSES].set(p["h_b2"])

    # pack the two bias rows into one buffer (one fewer prologue DMA)
    bias_pack = jnp.concatenate([b1_fused, b2_pad], axis=-1)           # (1, C*H+128)

    # block-diag spatial-mean operator, batch rows padded to 8 sublanes
    img_id = jnp.arange(N * HW) // HW
    avg = (jnp.arange(NPAD)[:, None] == img_id[None, :]).astype(jnp.float32) / HW

    return dict(avg=avg,
                stem_w=stem_w.astype(jnp.bfloat16),
                w1=w1_fused.astype(jnp.bfloat16),
                w2=w2_bd.astype(jnp.bfloat16),
                bias=bias_pack)


# ---------------- JAX glue ----------------
def custom_effnet2_forward(images_nchw, kp):
    # NCHW (PyTorch) -> NHWC; single-op patch extraction (im2col).
    x = jnp.transpose(images_nchw, (0, 2, 3, 1)).astype(jnp.float32)
    col = jax.lax.conv_general_dilated_patches(
        x, filter_shape=(KH, KW), window_strides=(STRIDE, STRIDE),
        padding=((PAD, PAD), (PAD, PAD)),
        dimension_numbers=('NHWC', 'HWIO', 'NHWC'))       # (N, HO, WO, CIN*KH*KW)
    col = col.reshape(N * HW, KRAW)
    # append bias lane (ones) + zero-pad K to 32, cast MXU operand to bf16
    col = jnp.concatenate(
        [col, jnp.ones((N * HW, 1), jnp.float32),
         jnp.zeros((N * HW, KPAD - KRAW - 1), jnp.float32)], axis=-1)
    col = col.astype(jnp.bfloat16)

    # single fused pallas_call; no grid (tiny problem, grid = serial loop)
    out = pl.pallas_call(
        fused_effnet2_kernel,
        out_shape=jax.ShapeDtypeStruct((NPAD, LANE_OUT), jnp.float32),
        in_specs=[VMEM_SPEC] * 6,
        out_specs=VMEM_SPEC,
    )(col, kp["avg"], kp["stem_w"], kp["w1"], kp["w2"], kp["bias"])
    return out[:N, :NUM_CLASSES]


if __name__ == "__main__":
    key = jax.random.PRNGKey(0)
    pkey, xkey = jax.random.split(key)
    raw_params = init_params(pkey)
    kparams = fold_params(raw_params)
    images = jax.random.normal(xkey, (N, CIN, IMG, IMG), jnp.float32)  # NCHW

    fwd = jax.jit(lambda im: custom_effnet2_forward(im, kparams))
    logits = fwd(images)
    jax.block_until_ready(logits)
    assert logits.shape == (N, NUM_CLASSES) and logits.dtype == jnp.float32
    assert bool(jnp.all(jnp.isfinite(logits)))
    print("KERNEL_OK")
</pallas_src>

<mosaic_0001>
module attributes {stable_mosaic.version = 11 : i64} {
  func.func @fused_effnet2_kernel(%arg0: memref<128x32xbf16, #tpu.memory_space<vmem>>, %arg1: memref<8x128xf32, #tpu.memory_space<vmem>>, %arg2: memref<32x32xbf16, #tpu.memory_space<vmem>>, %arg3: memref<32x1024xbf16, #tpu.memory_space<vmem>>, %arg4: memref<1024x128xbf16, #tpu.memory_space<vmem>>, %arg5: memref<1x1152xf32, #tpu.memory_space<vmem>>, %arg6: memref<8x128xf32, #tpu.memory_space<vmem>>) attributes {dimension_semantics = [], scalar_prefetch = 0 : i64, scratch_operands = 0 : i64, tpu.core_type = #tpu.core_type<tc>} {
    %c0 = arith.constant 0 : index
    %c0_0 = arith.constant 0 : index
    %0 = vector.load %arg0[%c0, %c0_0] : memref<128x32xbf16, #tpu.memory_space<vmem>>, vector<128x32xbf16>
    %c0_1 = arith.constant 0 : index
    %c0_2 = arith.constant 0 : index
    %1 = vector.load %arg2[%c0_1, %c0_2] : memref<32x32xbf16, #tpu.memory_space<vmem>>, vector<32x32xbf16>
    %cst = arith.constant dense<0.000000e+00> : vector<128x32xf32>
    %2 = tpu.matmul %0, %1, %cst {dimension_numbers = #tpu.dot_dimension_numbers<[1], [0], [0], [1], [0, 0, 1, 1], [], []>} : vector<128x32xbf16>, vector<32x32xbf16>, vector<128x32xf32> -> vector<128x32xf32>
    %3 = arith.negf %2 : vector<128x32xf32>
    %4 = math.exp %3 : vector<128x32xf32>
    %cst_3 = arith.constant 1.000000e+00 : f32
    %5 = vector.broadcast %cst_3 : f32 to vector<128x32xf32>
    %6 = arith.addf %5, %4 : vector<128x32xf32>
    %7 = arith.divf %5, %6 : vector<128x32xf32>
    %8 = arith.mulf %2, %7 : vector<128x32xf32>
    %cst_4 = arith.constant 9.99999997E-7 : f32
    %9 = vector.broadcast %cst_4 : f32 to vector<128x32xf32>
    %10 = arith.maximumf %8, %9 : vector<128x32xf32>
    %11 = arith.mulf %10, %10 : vector<128x32xf32>
    %12 = arith.mulf %11, %10 : vector<128x32xf32>
    %c0_5 = arith.constant 0 : index
    %c0_6 = arith.constant 0 : index
    %13 = vector.load %arg1[%c0_5, %c0_6] : memref<8x128xf32, #tpu.memory_space<vmem>>, vector<8x128xf32>
    %cst_7 = arith.constant dense<0.000000e+00> : vector<8x32xf32>
    %14 = tpu.matmul %13, %12, %cst_7 {dimension_numbers = #tpu.dot_dimension_numbers<[1], [0], [0], [1], [0, 0, 1, 1], [], []>} : vector<8x128xf32>, vector<128x32xf32>, vector<8x32xf32> -> vector<8x32xf32>
    %cst_8 = arith.constant 1.000000e-30 : f32
    %15 = vector.broadcast %cst_8 : f32 to vector<8x32xf32>
    %16 = arith.maximumf %14, %15 : vector<8x32xf32>
    %17 = math.log %16 : vector<8x32xf32>
    %cst_9 = arith.constant 0.333333343 : f32
    %18 = vector.broadcast %cst_9 : f32 to vector<8x32xf32>
    %19 = arith.mulf %17, %18 : vector<8x32xf32>
    %20 = math.exp %19 : vector<8x32xf32>
    %c0_10 = arith.constant 0 : index
    %c0_11 = arith.constant 0 : index
    %21 = vector.load %arg5[%c0_10, %c0_11] : memref<1x1152xf32, #tpu.memory_space<vmem>>, vector<1x1024xf32>
    %22 = arith.truncf %20 : vector<8x32xf32> to vector<8x32xbf16>
    %c0_12 = arith.constant 0 : index
    %c0_13 = arith.constant 0 : index
    %23 = vector.load %arg3[%c0_12, %c0_13] : memref<32x1024xbf16, #tpu.memory_space<vmem>>, vector<32x1024xbf16>
    %cst_14 = arith.constant dense<0.000000e+00> : vector<8x1024xf32>
    %24 = tpu.matmul %22, %23, %cst_14 {dimension_numbers = #tpu.dot_dimension_numbers<[1], [0], [0], [1], [0, 0, 1, 1], [], []>} : vector<8x32xbf16>, vector<32x1024xbf16>, vector<8x1024xf32> -> vector<8x1024xf32>
    %25 = vector.broadcast %21 : vector<1x1024xf32> to vector<8x1024xf32>
    %26 = arith.addf %24, %25 : vector<8x1024xf32>
    %cst_15 = arith.constant 0.000000e+00 : f32
    %27 = vector.broadcast %cst_15 : f32 to vector<8x1024xf32>
    %28 = arith.maximumf %26, %27 : vector<8x1024xf32>
    %c0_16 = arith.constant 0 : index
    %c1024 = arith.constant 1024 : index
    %29 = vector.load %arg5[%c0_16, %c1024] : memref<1x1152xf32, #tpu.memory_space<vmem>>, vector<1x128xf32>
    %30 = arith.truncf %28 : vector<8x1024xf32> to vector<8x1024xbf16>
    %c0_17 = arith.constant 0 : index
    %c0_18 = arith.constant 0 : index
    %31 = vector.load %arg4[%c0_17, %c0_18] : memref<1024x128xbf16, #tpu.memory_space<vmem>>, vector<1024x128xbf16>
    %cst_19 = arith.constant dense<0.000000e+00> : vector<8x128xf32>
    %32 = tpu.matmul %30, %31, %cst_19 {dimension_numbers = #tpu.dot_dimension_numbers<[1], [0], [0], [1], [0, 0, 1, 1], [], []>} : vector<8x1024xbf16>, vector<1024x128xbf16>, vector<8x128xf32> -> vector<8x128xf32>
    %33 = vector.broadcast %29 : vector<1x128xf32> to vector<8x128xf32>
    %34 = arith.addf %32, %33 : vector<8x128xf32>
    %c0_20 = arith.constant 0 : index
    %c0_21 = arith.constant 0 : index
    %35 = vector.load %arg6[%c0_20, %c0_21] : memref<8x128xf32, #tpu.memory_space<vmem>>, vector<8x128xf32>
    tpu.vector_store %arg6[%c0_20, %c0_21], %34 {strides = array<i32>} : memref<8x128xf32, #tpu.memory_space<vmem>>, vector<8x128xf32>,
    return
  }
}

</mosaic_0001>

<bundles_post_ra>
// kernel: _lambda_.1
= control target key start
LH: loop header
LB: loop body
LE: loop exit
PB: predicated region body
PF: predicated region fallthrough
CT: control target
= control target key end

     0   :  { %vm96_vm0 = vcmask 261120   ;;  %v1920_v10 = vmov 0.0|0.0   ;;  %vm1921_vm1 = vmmov 0   ;;  %v1922_v11 = vmov 0.0   ;;  %s2351_s2 = inlined_call_operand.vmem [shape: bf16[32,32], index: 2, kind: input, shape index: {}]   ;;  %s2352_s0 = inlined_call_operand.vmem [shape: bf16[128,32], index: 0, kind: input, shape index: {}]   ;;  %s2353_s1 = inlined_call_operand.vmem [shape: f32[8,128], index: 1, kind: input, shape index: {}]   ;;  %s2354_s3 = inlined_call_operand.vmem [shape: bf16[32,1024], index: 3, kind: input, shape index: {}]   ;;  %s2355_s4 = inlined_call_operand.vmem [shape: bf16[1024,128], index: 4, kind: input, shape index: {}]   ;;  %s2356_s5 = inlined_call_operand.vmem [shape: f32[1,1152], index: 5, kind: input, shape index: {}]   ;;  %s2357_s6 = inlined_call_operand.vmem [shape: f32[8,128], index: 6, kind: output, shape index: {}]  }
   0x1   :  { %v1778_v0 = vld [vmem:[%s2351_s2] sm:$0xff]   ;;  %v1779_v1 = vld [vmem:[%s2351_s2 + $0x8] sm:$0xff]   ;;  %v1782_v4 = vld [vmem:[%s2352_s0 + $0x10] sm:$0xff]   ;;  %1750 = vmatprep.subr.bf16.mxu1 %v1920_v10  ;;  %1747 = vmatprep.mubr.msk.f32.mxu1 %vm1921_vm1, %v1922_v11 }
   0x2   :  { %1695 = vmatprep.subr.bf16.mxu0 %v1778_v0  ;;  %v1780_v2 = vld [vmem:[%s2352_s0] sm:$0xff]   ;;  %v1781_v3 = vld [vmem:[%s2352_s0 + $0x8] sm:$0xff]   ;;  %v1783_v5 = vld [vmem:[%s2352_s0 + $0x18] sm:$0xff]  }
   0x3   :  { %1696 = vmatpush3.bf16.msra.mxu0 %v1778_v0  ;;  %1699 = vmatprep.mubr.msk.bf16.mxu0 %vm96_vm0, %v1780_v2  ;;  %v1784_v6 = vld [vmem:[%s2352_s0 + $0x20] sm:$0xff]   ;;  %v1785_v7 = vld [vmem:[%s2352_s0 + $0x28] sm:$0xff]   ;;  %v1786_v8 = vld [vmem:[%s2352_s0 + $0x30] sm:$0xff]  }
   0x4   :  { %1697 = vmatprep.subr.bf16.mxu0 %v1779_v1  ;;  %v1787_v9 = vld [vmem:[%s2352_s0 + $0x38] sm:$0xff]  }
   0x7   :  { %1698 = vmatpush3.bf16.msra.mxu0 %v1779_v1 }
   0xa   :  { %1700 = vmatmul.mubr.msk.bf16.vlgmr.msra.gmra.mrb[0].mxu0 %vm96_vm0, %v1781_v3 }
   0xb   :  { %1703 = vmatprep.mubr.msk.bf16.mxu0 %vm96_vm0, %v1782_v4 }
  0x12   :  { %1704 = vmatmul.mubr.msk.bf16.gmra.mrb[4].mxu0 %vm96_vm0, %v1783_v5 }
  0x13   :  { %1707 = vmatprep.mubr.msk.bf16.mxu0 %vm96_vm0, %v1784_v6 }
  0x1a   :  { %1708 = vmatmul.mubr.msk.bf16.gmra.mrb[8].mxu0 %vm96_vm0, %v1785_v7 }
  0x1b   :  { %1711 = vmatprep.mubr.msk.bf16.mxu0 %vm96_vm0, %v1786_v8 }
  0x22   :  { %1712 = vmatmul.mubr.msk.bf16.gmra.mrb[12].mxu0 %vm96_vm0, %v1787_v9 }
  0xdd   :  { %v1998_v12 = vpop.f32.mrb[0].mxu0 }
  0xde   :  { %v1481_v13 = vmul.f32 -1.442695, %v1998_v12  ;;  %v2001_v14 = vpop.f32.mrb[1].mxu0 }
  0xdf   :  { %v1479_v15 = vmul.f32 -1.442695, %v2001_v14  ;;  %v2004_v16 = vpop.f32.mrb[2].mxu0 }
  0xe0   :  { %1852 = vpow2.f32 %v1481_v13  ;;  %v1482_v17 = vmul.f32 -1.442695, %v2004_v16  ;;  %v2007_v18 = vpop.f32.mrb[3].mxu0 }
  0xe1   :  { %1854 = vpow2.f32 %v1479_v15  ;;  %v1480_v19 = vmul.f32 -1.442695, %v2007_v18 }
  0xe2   :  { %1856 = vpow2.f32 %v1482_v17 }
  0xe3   :  { %1858 = vpow2.f32 %v1480_v19 }
  0xe5   :  { %v2010_v20 = vpop.f32.mrb[4].mxu0 }
  0xe6   :  { %v1485_v21 = vmul.f32 -1.442695, %v2010_v20  ;;  %v2013_v22 = vpop.f32.mrb[5].mxu0 }
  0xe7   :  { %v1483_v23 = vmul.f32 -1.442695, %v2013_v22  ;;  %v2016_v24 = vpop.f32.mrb[6].mxu0 }
  0xe8   :  { %1860 = vpow2.f32 %v1485_v21  ;;  %v1486_v25 = vmul.f32 -1.442695, %v2016_v24  ;;  %v2019_v26 = vpop.f32.mrb[7].mxu0 }
  0xe9   :  { %1862 = vpow2.f32 %v1483_v23  ;;  %v1484_v27 = vmul.f32 -1.442695, %v2019_v26 }
  0xea   :  { %v1853_v28 = vpop.eup %1852  ;;  %1864 = vpow2.f32 %v1486_v25 }
  0xeb   :  { %v1855_v29 = vpop.eup %1854  ;;  %v268_v30 = vadd.f32 1.0, %v1853_v28  ;;  %1866 = vpow2.f32 %v1484_v27 }
  0xec   :  { %v1857_v31 = vpop.eup %1856  ;;  %v266_v32 = vadd.f32 1.0, %v1855_v29 }
  0xed   :  { %v1859_v33 = vpop.eup %1858  ;;  %1868 = vrcp.f32 %v268_v30  ;;  %v269_v34 = vadd.f32 1.0, %v1857_v31  ;;  %v2022_v35 = vpop.f32.mrb[8].mxu0 }
  0xee   :  { %1870 = vrcp.f32 %v266_v32  ;;  %v267_v36 = vadd.f32 1.0, %v1859_v33  ;;  %v1489_v37 = vmul.f32 -1.442695, %v2022_v35  ;;  %v2025_v38 = vpop.f32.mrb[9].mxu0 }
  0xef   :  { %1872 = vrcp.f32 %v269_v34  ;;  %v1487_v39 = vmul.f32 -1.442695, %v2025_v38  ;;  %v2028_v40 = vpop.f32.mrb[10].mxu0 }
  0xf0   :  { %1874 = vrcp.f32 %v267_v36  ;;  %v1490_v41 = vmul.f32 -1.442695, %v2028_v40  ;;  %v2031_v42 = vpop.f32.mrb[11].mxu0 }
  0xf1   :  { %1876 = vpow2.f32 %v1489_v37  ;;  %v1488_v43 = vmul.f32 -1.442695, %v2031_v42 }
  0xf2   :  { %v1861_v44 = vpop.eup %1860  ;;  %1878 = vpow2.f32 %v1487_v39 }
  0xf3   :  { %v1863_v45 = vpop.eup %1862  ;;  %v272_v46 = vadd.f32 1.0, %v1861_v44  ;;  %1880 = vpow2.f32 %v1490_v41 }
  0xf4   :  { %v1865_v47 = vpop.eup %1864  ;;  %v270_v48 = vadd.f32 1.0, %v1863_v45  ;;  %1882 = vpow2.f32 %v1488_v43 }
  0xf5   :  { %v1867_v49 = vpop.eup %1866  ;;  %1884 = vrcp.f32 %v272_v46  ;;  %v273_v50 = vadd.f32 1.0, %v1865_v47  ;;  %v2034_v51 = vpop.f32.mrb[12].mxu0 }
  0xf6   :  { %1886 = vrcp.f32 %v270_v48  ;;  %v271_v52 = vadd.f32 1.0, %v1867_v49  ;;  %v1493_v53 = vmul.f32 -1.442695, %v2034_v51  ;;  %v2037_v54 = vpop.f32.mrb[13].mxu0 }
  0xf7   :  { %v1869_v55 = vpop.eup %1868  ;;  %1888 = vrcp.f32 %v273_v50  ;;  %v1491_v56 = vmul.f32 -1.442695, %v2037_v54  ;;  %v2040_v57 = vpop.f32.mrb[14].mxu0 }
  0xf8   :  { %v1871_v58 = vpop.eup %1870  ;;  %v316_v59 = vmul.f32 %v1869_v55, %v1998_v12  ;;  %1890 = vrcp.f32 %v271_v52  ;;  %v1494_v60 = vmul.f32 -1.442695, %v2040_v57  ;;  %v2044_v61 = vpop.f32.mrb[15].mxu0 }
  0xf9   :  { %v1873_v62 = vpop.eup %1872  ;;  %v314_v63 = vmul.f32 %v1871_v58, %v2001_v14  ;;  %1892 = vpow2.f32 %v1493_v53  ;;  %v1492_v0 = vmul.f32 -1.442695, %v2044_v61 }
  0xfa   :  { %v1875_v1 = vpop.eup %1874  ;;  %v332_v2 = vmax.f32 %v316_v59, 1e-06  ;;  %v317_v3 = vmul.f32 %v1873_v62, %v2004_v16  ;;  %1894 = vpow2.f32 %v1491_v56 }
  0xfb   :  { %v1877_v4 = vpop.eup %1876  ;;  %v330_v5 = vmax.f32 %v314_v63, 1e-06  ;;  %v315_v6 = vmul.f32 %v1875_v1, %v2007_v18  ;;  %1896 = vpow2.f32 %v1494_v60 }
  0xfc   :  { %v1879_v7 = vpop.eup %1878  ;;  %v348_v8 = vmul.f32 %v332_v2, %v332_v2  ;;  %v333_v9 = vmax.f32 %v317_v3, 1e-06  ;;  %v276_v11 = vadd.f32 1.0, %v1877_v4  ;;  %1898 = vpow2.f32 %v1492_v0 }
  0xfd   :  { %v1881_v12 = vpop.eup %1880  ;;  %v346_v13 = vmul.f32 %v330_v5, %v330_v5  ;;  %v331_v14 = vmax.f32 %v315_v6, 1e-06  ;;  %v274_v15 = vadd.f32 1.0, %v1879_v7 }
  0xfe   :  { %v1883_v17 = vpop.eup %1882  ;;  %v349_v19 = vmul.f32 %v333_v9, %v333_v9  ;;  %1900 = vrcp.f32 %v276_v11  ;;  %v277_v21 = vadd.f32 1.0, %v1881_v12  ;;  %v364_v18 = vmul.f32 %v348_v8, %v332_v2 }
  0xff   :  { %v1885_v16 = vpop.eup %1884  ;;  %v347_v23 = vmul.f32 %v331_v14, %v331_v14  ;;  %1902 = vrcp.f32 %v274_v15  ;;  %v275_v25 = vadd.f32 1.0, %v1883_v17  ;;  %v362_v32 = vmul.f32 %v346_v13, %v330_v5 }
 0x100   :  { %v1887_v27 = vpop.eup %1886  ;;  %v365_v28 = vmul.f32 %v349_v19, %v333_v9  ;;  %v320_v29 = vmul.f32 %v1885_v16, %v2010_v20  ;;  %1904 = vrcp.f32 %v277_v21 }
 0x101   :  { %v1889_v30 = vpop.eup %1888  ;;  %v318_v31 = vmul.f32 %v1887_v27, %v2013_v22  ;;  %1906 = vrcp.f32 %v275_v25  ;;  %v363_v33 = vmul.f32 %v347_v23, %v331_v14 }
 0x102   :  { %v1891_v34 = vpop.eup %1890  ;;  %v336_v36 = vmax.f32 %v320_v29, 1e-06  ;;  %v321_v37 = vmul.f32 %v1889_v30, %v2016_v24  ;;  %v1754_v39 = vpack.c.bf16 %v365_v28, %v364_v18 }
 0x103   :  { %v1893_v41 = vpop.eup %1892  ;;  %v334_v43 = vmax.f32 %v318_v31, 1e-06  ;;  %v319_v44 = vmul.f32 %v1891_v34, %v2019_v26  ;;  %v1751_v45 = vpack.c.bf16 %v363_v33, %v362_v32 }
 0x104   :  { %v1895_v46 = vpop.eup %1894  ;;  %v352_v47 = vmul.f32 %v336_v36, %v336_v36  ;;  %v337_v20 = vmax.f32 %v321_v37, 1e-06  ;;  %v280_v48 = vadd.f32 1.0, %v1893_v41 }
 0x105   :  { %v1897_v49 = vpop.eup %1896  ;;  %v350_v50 = vmul.f32 %v334_v43, %v334_v43  ;;  %v335_v22 = vmax.f32 %v319_v44, 1e-06  ;;  %v278_v52 = vadd.f32 1.0, %v1895_v46  ;;  %1752 = vmatpush3.bf16.msra.mxu1 %v1751_v45 }
 0x106   :  { %v1899_v53 = vpop.eup %1898  ;;  %v353_v55 = vmul.f32 %v337_v20, %v337_v20  ;;  %1908 = vrcp.f32 %v280_v48  ;;  %v281_v56 = vadd.f32 1.0, %v1897_v49  ;;  %1753 = vmatprep.subr.bf16.mxu1 %v1920_v10  ;;  %v368_v59 = vmul.f32 %v352_v47, %v336_v36  ;;  %v457_v47 = vld [vmem:[%s2354_s3] sm:$0xff]  ;;  %v458_v48 = vld [vmem:[%s2354_s3 + $0x8] sm:$0xff] }
 0x107   :  { %v351_v24 = vmul.f32 %v335_v22, %v335_v22  ;;  %1910 = vrcp.f32 %v278_v52  ;;  %v279_v58 = vadd.f32 1.0, %v1899_v53  ;;  %v366_v63 = vmul.f32 %v350_v50, %v334_v43  ;;  %v465_v53 = vld [vmem:[%s2354_s3 + $0x40] sm:$0xff] }
 0x108   :  { %v1901_v26 = vpop.eup %1900  ;;  %v369_v60 = vmul.f32 %v353_v55, %v337_v20  ;;  %1912 = vrcp.f32 %v281_v56  ;;  %v461_v20 = vld [vmem:[%s2354_s3 + $0x20] sm:$0xff]  ;;  %v466_v56 = vld [vmem:[%s2354_s3 + $0x48] sm:$0xff] }
 0x109   :  { %v1903_v62 = vpop.eup %1902  ;;  %v367_v0 = vmul.f32 %v351_v24, %v335_v22  ;;  %v324_v1 = vmul.f32 %v1901_v26, %v2022_v35  ;;  %1914 = vrcp.f32 %v279_v58  ;;  %1755 = vmatpush3.bf16.msra.mxu1 %v1754_v39  ;;  %v1496_v49 = vcombine.high %v457_v47, %v461_v20  ;;  %v469_v55 = vld [vmem:[%s2354_s3 + $0x60] sm:$0xff]  ;;  %v470_v58 = vld [vmem:[%s2354_s3 + $0x68] sm:$0xff] }
 0x10a   :  { %v1905_v2 = vpop.eup %1904  ;;  %v322_v3 = vmul.f32 %v1903_v62, %v2025_v38  ;;  %1756 = vmatprep.subr.bf16.mxu1 %v1920_v10  ;;  %v1760_v4 = vpack.c.bf16 %v369_v60, %v368_v59  ;;  %v1495_v50 = vcombine.low %v457_v47, %v461_v20  ;;  %v1504_v24 = vcombine.high %v465_v53, %v469_v55  ;;  %v459_v62 = vld [vmem:[%s2354_s3 + $0x10] sm:$0xff]  ;;  %v1810_v47 = vld [vmem:[%s2355_s4 + $0x28] sm:$0xff]  }
 0x10b   :  { %v1907_v5 = vpop.eup %1906  ;;  %v340_v6 = vmax.f32 %v324_v1, 1e-06  ;;  %v325_v7 = vmul.f32 %v1905_v2, %v2028_v40  ;;  %v1757_v8 = vpack.c.bf16 %v367_v0, %v366_v63  ;;  %597 = vmatprep.subr.bf16.mxu0 %v1496_v49  ;;  %v1503_v26 = vcombine.low %v465_v53, %v469_v55  ;;  %v463_v63 = vld [vmem:[%s2354_s3 + $0x30] sm:$0xff]  ;;  %v460_v0 = vld [vmem:[%s2354_s3 + $0x18] sm:$0xff]  ;;  %v1811_v20 = vld [vmem:[%s2355_s4 + $0xa8] sm:$0xff]  }
 0x10c   :  { %v338_v9 = vmax.f32 %v322_v3, 1e-06  ;;  %v323_v11 = vmul.f32 %v1907_v5, %v2031_v42  ;;  %598 = vmatpush1.bf16.msra.mxu0 %v1495_v50  ;;  %v1505_v59 = vcombine.low %v466_v56, %v470_v58  ;;  %v1506_v60 = vcombine.high %v466_v56, %v470_v58  ;;  %v464_v2 = vld [vmem:[%s2354_s3 + $0x38] sm:$0xff]  ;;  %v1813_v49 = vld [vmem:[%s2355_s4 + $0xf0] sm:$0xff]   ;;  %v1820_v56 = vld [vmem:[%s2355_s4 + $0x140] sm:$0xff]  }
 0x10d   :  { %v356_v12 = vmul.f32 %v340_v6, %v340_v6  ;;  %v341_v13 = vmax.f32 %v325_v7, 1e-06  ;;  %1758 = vmatpush3.bf16.msra.mxu1 %v1757_v8  ;;  %599 = vmatprep.subr.bf16.mxu0 %v1504_v24  ;;  %v1500_v1 = vcombine.high %v459_v62, %v463_v63  ;;  %v1923_v3 = vmov 0   ;;  %v1815_v50 = vld [vmem:[%s2355_s4 + $0xb0] sm:$0xff]   ;;  %v1818_v53 = vld [vmem:[%s2355_s4 + $0x38] sm:$0xff]   ;;  %v1821_v24 = vld [vmem:[%s2355_s4 + $0x1c0] sm:$0xff]  }
 0x10e   :  { %v354_v35 = vmul.f32 %v338_v9, %v338_v9  ;;  %v339_v14 = vmax.f32 %v323_v11, 1e-06  ;;  %1759 = vmatprep.subr.bf16.mxu1 %v1920_v10  ;;  %629 = vmatprep.mubr.bf16.mxu0 %v1923_v3  ;;  %v1501_v5 = vcombine.low %v460_v0, %v464_v2  ;;  %v1819_v55 = vld [vmem:[%s2355_s4 + $0xb8] sm:$0xff]   ;;  %v474_v58 = vlaneseq }
 0x10f   :  { %v357_v15 = vmul.f32 %v341_v13, %v341_v13  ;;  %v372_v21 = vmul.f32 %v356_v12, %v340_v6  ;;  %v1502_v6 = vcombine.high %v460_v0, %v464_v2 }
 0x110   :  { %v1909_v38 = vpop.eup %1908  ;;  %v355_v17 = vmul.f32 %v339_v14, %v339_v14  ;;  %v370_v25 = vmul.f32 %v354_v35, %v338_v9  ;;  %600 = vmatpush1.bf16.msra.mxu0 %v1503_v26  ;;  %v2226_v26 = vshrl.u32 %v474_v58, 7  ;;  %v1837_v58 = vld [vmem:[%s2355_s4 + $0x1e0] sm:$0xff]  }
 0x111   :  { %v1911_v19 = vpop.eup %1910  ;;  %v373_v16 = vmul.f32 %v357_v15, %v341_v13  ;;  %v328_v23 = vmul.f32 %v1909_v38, %v2034_v51  ;;  %1761 = vmatpush3.bf16.msra.mxu1 %v1760_v4  ;;  %v1499_v4 = vcombine.low %v459_v62, %v463_v63  ;;  %679 = vmatprep.subr.bf16.mxu0 %v1500_v1  ;;  %v471_v15 = vld [vmem:[%s2354_s3 + $0x70] sm:$0xff]  ;;  %v468_v38 = vld [vmem:[%s2354_s3 + $0x58] sm:$0xff]  ;;  %v2233_v62 = vld [vmem:[%s2356_s5] sm:$0xff] }
 0x112   :  { %v1913_v40 = vpop.eup %1912  ;;  %v371_v27 = vmul.f32 %v355_v17, %v339_v14  ;;  %v326_v42 = vmul.f32 %v1911_v19, %v2037_v54  ;;  %1762 = vmatprep.subr.bf16.mxu1 %v1920_v10  ;;  %v467_v14 = vld [vmem:[%s2354_s3 + $0x50] sm:$0xff]  ;;  %v472_v17 = vld [vmem:[%s2354_s3 + $0x78] sm:$0xff]  ;;  %v480_v63 = vsub.s32 1, %v2226_v26  ;;  %v488_v0 = vsub.s32 3, %v2226_v26 }
 0x113   :  { %v1915_v18 = vpop.eup %1914  ;;  %v344_v28 = vmax.f32 %v328_v23, 1e-06  ;;  %v329_v29 = vmul.f32 %v1913_v40, %v2040_v57  ;;  %v1766_v30 = vpack.c.bf16 %v373_v16, %v372_v21  ;;  %v1508_v16 = vcombine.high %v467_v14, %v471_v15 }
 0x114   :  { %v342_v31 = vmax.f32 %v326_v42, 1e-06  ;;  %v327_v32 = vmul.f32 %v1915_v18, %v2044_v61  ;;  %v1763_v33 = vpack.c.bf16 %v371_v27, %v370_v25  ;;  %v378_v61 = vld [vmem:[%s2353_s1] sm:$0xff]  ;;  %v1510_v23 = vcombine.high %v468_v38, %v472_v17 }
 0x115   :  { %v360_v34 = vmul.f32 %v344_v28, %v344_v28  ;;  %v345_v36 = vmax.f32 %v329_v29, 1e-06  ;;  %v1507_v40 = vcombine.low %v467_v14, %v471_v15  ;;  %v1509_v25 = vcombine.low %v468_v38, %v472_v17  ;;  %v1788_v27 = vld [vmem:[%s2355_s4 + $0x40] sm:$0xff]   ;;  %v1792_v29 = vld [vmem:[%s2355_s4 + $0x48] sm:$0xff]  }
 0x116   :  { %v358_v51 = vmul.f32 %v342_v31, %v342_v31  ;;  %v343_v37 = vmax.f32 %v327_v32, 1e-06  ;;  %1764 = vmatpush3.bf16.msra.mxu1 %v1763_v33  ;;  %v1789_v42 = vld [vmem:[%s2355_s4 + $0xc0] sm:$0xff]   ;;  %v1795_v32 = vld [vmem:[%s2355_s4 + $0x88] sm:$0xff]   ;;  %v1796_v33 = vld [vmem:[%s2355_s4 + $0x50] sm:$0xff]   ;;  %v496_v15 = vsub.s32 5, %v2226_v26 }
 0x117   :  { %v361_v39 = vmul.f32 %v345_v36, %v345_v36  ;;  %1765 = vmatprep.subr.bf16.mxu1 %v1920_v10  ;;  %v376_v41 = vmul.f32 %v360_v34, %v344_v28  ;;  %v1790_v18 = vld [vmem:[%s2355_s4] sm:$0xff]   ;;  %v1797_v34 = vld [vmem:[%s2355_s4 + $0xd0] sm:$0xff]   ;;  %v504_v38 = vsub.s32 7, %v2226_v26 }
 0x118   :  { %v359_v54 = vmul.f32 %v343_v37, %v343_v37  ;;  %v374_v44 = vmul.f32 %v358_v51, %v342_v31  ;;  %v1791_v28 = vld [vmem:[%s2355_s4 + $0x80] sm:$0xff]   ;;  %v1794_v31 = vld [vmem:[%s2355_s4 + $0x8] sm:$0xff]   ;;  %v1799_v51 = vld [vmem:[%s2355_s4 + $0x90] sm:$0xff]  }
 0x119   :  { %v377_v43 = vmul.f32 %v361_v39, %v345_v36  ;;  %v1798_v36 = vld [vmem:[%s2355_s4 + $0x10] sm:$0xff]   ;;  %v1801_v39 = vld [vmem:[%s2355_s4 + $0xd8] sm:$0xff]  }
 0x11a   :  { %v375_v45 = vmul.f32 %v359_v54, %v343_v37  ;;  %1767 = vmatpush3.bf16.msra.mxu1 %v1766_v30  ;;  %v1793_v30 = vld [vmem:[%s2355_s4 + $0xc8] sm:$0xff]   ;;  %v1800_v37 = vld [vmem:[%s2355_s4 + $0x58] sm:$0xff]  }
 0x11b   :  { %1768 = vmatprep.subr.bf16.mxu1 %v1920_v10  ;;  %v1772_v57 = vpack.c.bf16 %v377_v43, %v376_v41  ;;  %v1802_v54 = vld [vmem:[%s2355_s4 + $0x18] sm:$0xff]   ;;  %v1804_v43 = vld [vmem:[%s2355_s4 + $0x60] sm:$0xff]  }
 0x11c   :  { %v1769_v46 = vpack.c.bf16 %v375_v45, %v374_v44  ;;  %v1803_v41 = vld [vmem:[%s2355_s4 + $0x98] sm:$0xff]   ;;  %v1805_v44 = vld [vmem:[%s2355_s4 + $0xe0] sm:$0xff]  }
 0x11d   :  { %v1806_v45 = vld [vmem:[%s2355_s4 + $0x20] sm:$0xff]  }
 0x11e   :  { %1770 = vmatpush3.bf16.msra.mxu1 %v1769_v46  ;;  %v1808_v46 = vld [vmem:[%s2355_s4 + $0x68] sm:$0xff]  }
 0x11f   :  { %1771 = vmatprep.subr.bf16.mxu1 %v1920_v10  ;;  %v462_v10 = vld [vmem:[%s2354_s3 + $0x28] sm:$0xff] }
 0x120   :  { %v1497_v22 = vcombine.low %v458_v48, %v462_v10  ;;  %v1498_v52 = vcombine.high %v458_v48, %v462_v10  ;;  %v1812_v48 = vld [vmem:[%s2355_s4 + $0x70] sm:$0xff]  }
 0x121   :  { %v1814_v10 = vld [vmem:[%s2355_s4 + $0x30] sm:$0xff]  }
 0x122   :  { %1773 = vmatpush3.bf16.msra.mxu1 %v1772_v57  ;;  %v1807_v57 = vld [vmem:[%s2355_s4 + $0xa0] sm:$0xff]  }
 0x123   :  { %638 = vmatprep.subr.bf16.mxu1 %v1498_v52  ;;  %v1817_v52 = vld [vmem:[%s2355_s4 + $0xf8] sm:$0xff]  }
 0x125   :  { %1748 = vmatmul.mubr.f32.vlgmr.msra.gmra.mrb[0].mxu1 %v378_v61  ;;  %v1809_v61 = vld [vmem:[%s2355_s4 + $0xe8] sm:$0xff]  }
 0x126   :  { %639 = vmatpush1.bf16.msra.mxu1 %v1497_v22  ;;  %670 = vmatprep.mubr.bf16.mxu1 %v1923_v3  ;;  %v1816_v22 = vld [vmem:[%s2355_s4 + $0x78] sm:$0xff]  }
 0x127   :  { %640 = vmatprep.subr.bf16.mxu1 %v1506_v60  ;;  %v484_v60 = vsub.s32 2, %v2226_v26 }
 0x129   :  { %v485_v2 = vrot.slane %v2233_v62, %v484_v60  ;;  %v1839_v60 = vld [vmem:[%s2355_s4 + $0x1a0] sm:$0xff]  }
 0x12a   :  { %641 = vmatpush1.bf16.msra.mxu1 %v1505_v59  ;;  %v476_v59 = vsub.s32 0, %v2226_v26 }
 0x12b   :  { %720 = vmatprep.subr.bf16.mxu1 %v1502_v6 }
 0x12c   :  { %v477_v1 = vrot.slane %v2233_v62, %v476_v59  ;;  %v1838_v59 = vld [vmem:[%s2355_s4 + $0x120] sm:$0xff]  }
 0x1f8   :  { %v445_v7 = vpop.f32.mrb[0].mxu1 }
 0x1f9   :  { %v449_v8 = vmax.f32 %v445_v7, 1e-30  ;;  %v1749_v9 = vpop.f32.mrb[1].mxu1 }
 0x1fb   :  { %1916 = vlog2.f32 %v449_v8 }
 0x205   :  { %v1917_v11 = vpop.eup %1916 }
 0x206   :  { %v451_v12 = vmul.f32 0.6931472, %v1917_v11 }
 0x208   :  { %v452_v13 = vmul.f32 0.33333334, %v451_v12 }
 0x20a   :  { %v453_v35 = vmul.f32 1.442695, %v452_v13 }
 0x20c   :  { %1918 = vpow2.f32 %v453_v35 }
 0x216   :  { %v1919_v19 = vpop.eup %1918 }
 0x217   :  { %v456_v21 = vpack.c.bf16 %v1919_v19, %v1919_v19 }
 0x219   :  { %1511 = vmatmul.mubr.msk.bf16.vlgmr.msra.gmra.mrb[16].mxu0 %vm96_vm0, %v456_v21  ;;  %1512 = vmatmul.mubr.msk.bf16.vlgmr.msra.gmra.mrb[4].mxu1 %vm96_vm0, %v456_v21 }
 0x21a   :  { %680 = vmatpush1.bf16.msra.mxu0 %v1499_v4  ;;  %721 = vmatpush1.bf16.msra.mxu1 %v1501_v5  ;;  %v489_v4 = vrot.slane %v2233_v62, %v488_v0  ;;  %v500_v0 = vsub.s32 6, %v2226_v26 }
 0x21b   :  { %681 = vmatprep.subr.bf16.mxu0 %v1508_v16  ;;  %722 = vmatprep.subr.bf16.mxu1 %v1510_v23 }
 0x21c   :  { %711 = vmatprep.mubr.bf16.mxu0 %v1923_v3  ;;  %752 = vmatprep.mubr.bf16.mxu1 %v1923_v3  ;;  %v481_v3 = vrot.slane %v2233_v62, %v480_v63  ;;  %v492_v63 = vsub.s32 4, %v2226_v26  ;;  %v1843_v26 = vld [vmem:[%s2355_s4 + $0x1a8] sm:$0xff]  }
 0x21e   :  { %682 = vmatpush1.bf16.msra.mxu0 %v1507_v40  ;;  %723 = vmatpush1.bf16.msra.mxu1 %v1509_v25 }
 0x21f   :  { %1607 = vmatprep.subr.bf16.mxu0 %v1788_v27  ;;  %1629 = vmatprep.subr.bf16.mxu1 %v1789_v42  ;;  %v497_v42 = vrot.slane %v2233_v62, %v496_v15 }
 0x221   :  { %1513 = vmatmul.mubr.msk.bf16.vlgmr.msra.gmra.mrb[20].mxu0 %vm96_vm0, %v456_v21  ;;  %1514 = vmatmul.mubr.msk.bf16.vlgmr.msra.gmra.mrb[8].mxu1 %vm96_vm0, %v456_v21 }
 0x222   :  { %1608 = vmatpush3.bf16.msra.mxu0 %v1790_v18  ;;  %1630 = vmatpush3.bf16.msra.mxu1 %v1791_v28  ;;  %v505_v18 = vrot.slane %v2233_v62, %v504_v38  ;;  %v1822_v28 = vld [vmem:[%s2355_s4 + $0x100] sm:$0xff]  }
 0x223   :  { %1609 = vmatprep.subr.bf16.mxu0 %v1792_v29  ;;  %1631 = vmatprep.subr.bf16.mxu1 %v1793_v30  ;;  %v1823_v29 = vld [vmem:[%s2355_s4 + $0x180] sm:$0xff]  }
 0x226   :  { %1610 = vmatpush3.bf16.msra.mxu0 %v1794_v31  ;;  %1632 = vmatpush3.bf16.msra.mxu1 %v1795_v32  ;;  %v1824_v32 = vld [vmem:[%s2355_s4 + $0x148] sm:$0xff]  }
 0x227   :  { %1611 = vmatprep.subr.bf16.mxu0 %v1796_v33  ;;  %1633 = vmatprep.subr.bf16.mxu1 %v1797_v34  ;;  %v1825_v33 = vld [vmem:[%s2355_s4 + $0x1c8] sm:$0xff]  }
 0x22a   :  { %1612 = vmatpush3.bf16.msra.mxu0 %v1798_v36  ;;  %1634 = vmatpush3.bf16.msra.mxu1 %v1799_v51 }
 0x22b   :  { %1613 = vmatprep.subr.bf16.mxu0 %v1800_v37  ;;  %1635 = vmatprep.subr.bf16.mxu1 %v1801_v39 }
 0x22e   :  { %1614 = vmatpush3.bf16.msra.mxu0 %v1802_v54  ;;  %1636 = vmatpush3.bf16.msra.mxu1 %v1803_v41 }
 0x22f   :  { %1615 = vmatprep.subr.bf16.mxu0 %v1804_v43  ;;  %1637 = vmatprep.subr.bf16.mxu1 %v1805_v44  ;;  %v1826_v44 = vld [vmem:[%s2355_s4 + $0x108] sm:$0xff]  }
 0x232   :  { %1616 = vmatpush3.bf16.msra.mxu0 %v1806_v45  ;;  %1638 = vmatpush3.bf16.msra.mxu1 %v1807_v57  ;;  %v1827_v45 = vld [vmem:[%s2355_s4 + $0x188] sm:$0xff]  }
 0x233   :  { %1617 = vmatprep.subr.bf16.mxu0 %v1808_v46  ;;  %1639 = vmatprep.subr.bf16.mxu1 %v1809_v61  ;;  %v1828_v61 = vld [vmem:[%s2355_s4 + $0x150] sm:$0xff]  }
 0x236   :  { %1618 = vmatpush3.bf16.msra.mxu0 %v1810_v47  ;;  %1640 = vmatpush3.bf16.msra.mxu1 %v1811_v20  ;;  %v1829_v47 = vld [vmem:[%s2355_s4 + $0x1d0] sm:$0xff]  }
 0x237   :  { %1619 = vmatprep.subr.bf16.mxu0 %v1812_v48  ;;  %1641 = vmatprep.subr.bf16.mxu1 %v1813_v49 }
 0x23a   :  { %1620 = vmatpush3.bf16.msra.mxu0 %v1814_v10  ;;  %1642 = vmatpush3.bf16.msra.mxu1 %v1815_v50  ;;  %v1830_v50 = vld [vmem:[%s2355_s4 + $0x110] sm:$0xff]  }
 0x23b   :  { %1621 = vmatprep.subr.bf16.mxu0 %v1816_v22  ;;  %1643 = vmatprep.subr.bf16.mxu1 %v1817_v52  ;;  %v1831_v22 = vld [vmem:[%s2355_s4 + $0x190] sm:$0xff]   ;;  %v1832_v52 = vld [vmem:[%s2355_s4 + $0x158] sm:$0xff]  }
 0x23e   :  { %1622 = vmatpush3.bf16.msra.mxu0 %v1818_v53  ;;  %1644 = vmatpush3.bf16.msra.mxu1 %v1819_v55  ;;  %v1833_v53 = vld [vmem:[%s2355_s4 + $0x1d8] sm:$0xff]  }
 0x23f   :  { %1651 = vmatprep.subr.bf16.mxu0 %v1820_v56  ;;  %1673 = vmatprep.subr.bf16.mxu1 %v1821_v24  ;;  %v1834_v55 = vld [vmem:[%s2355_s4 + $0x118] sm:$0xff]   ;;  %v1836_v24 = vld [vmem:[%s2355_s4 + $0x160] sm:$0xff]  }
 0x240   :  { %v1835_v56 = vld [vmem:[%s2355_s4 + $0x198] sm:$0xff]  }
 0x2ec   :  { %v631_v5 = vpop.f32.mrb[16].mxu0  ;;  %v672_v6 = vpop.f32.mrb[4].mxu1 }
 0x2ed   :  { %v632_v7 = vadd.f32 %v631_v5, %v477_v1  ;;  %v673_v8 = vadd.f32 %v672_v6, %v485_v2  ;;  %v633_v9 = vpop.f32.mrb[17].mxu0  ;;  %v674_v11 = vpop.f32.mrb[5].mxu1  ;;  %v1840_v1 = vld [vmem:[%s2355_s4 + $0x168] sm:$0xff]   ;;  %v501_v5 = vrot.slane %v2233_v62, %v500_v0  ;;  %v1844_v6 = vld [vmem:[%s2355_s4 + $0x170] sm:$0xff]  }
 0x2ee   :  { %v634_v12 = vadd.f32 %v633_v9, %v481_v3  ;;  %v675_v13 = vadd.f32 %v674_v11, %v489_v4  ;;  %v635_v35 = vpop.f32.mrb[18].mxu0  ;;  %v676_v14 = vpop.f32.mrb[6].mxu1  ;;  %v1841_v2 = vld [vmem:[%s2355_s4 + $0x1e8] sm:$0xff]   ;;  %v493_v4 = vrot.slane %v2233_v62, %v492_v63  ;;  %v1847_v62 = vld [vmem:[%s2355_s4 + $0x1b0] sm:$0xff]  }
 0x2ef   :  { %v761_v17 = vmax.f32 %v632_v7, 0.0  ;;  %v763_v19 = vmax.f32 %v673_v8, 0.0  ;;  %v636_v21 = vpop.f32.mrb[19].mxu0  ;;  %v677_v16 = vpop.f32.mrb[7].mxu1  ;;  %v1842_v3 = vld [vmem:[%s2355_s4 + $0x128] sm:$0xff]   ;;  %v1845_v7 = vld [vmem:[%s2355_s4 + $0x1f0] sm:$0xff]  }
 0x2f0   :  { %v762_v23 = vmax.f32 %v634_v12, 0.0  ;;  %v764_v40 = vmax.f32 %v675_v13, 0.0  ;;  %v1846_v8 = vld [vmem:[%s2355_s4 + $0x130] sm:$0xff]   ;;  %v1848_v12 = vld [vmem:[%s2355_s4 + $0x178] sm:$0xff]  }
 0x2f1   :  { %v770_v30 = vpack.c.bf16 %v761_v17, %v761_v17  ;;  %v772_v31 = vpack.c.bf16 %v763_v19, %v763_v19  ;;  %v1849_v13 = vld [vmem:[%s2355_s4 + $0x1f8] sm:$0xff]  }
 0x2f2   :  { %v771_v25 = vpack.c.bf16 %v762_v23, %v762_v23  ;;  %v773_v27 = vpack.c.bf16 %v764_v40, %v764_v40  ;;  %v1850_v35 = vld [vmem:[%s2355_s4 + $0x138] sm:$0xff]   ;;  %v1515_v23 = vld [vmem:[%s2356_s5 + $0x8] ss:$0 sm:$0xff] }
 0x2f3   :  { %v1851_v14 = vld [vmem:[%s2355_s4 + $0x1b8] sm:$0xff]  }
 0x2f4   :  { %v2257_v34 = vpop.f32.mrb[20].mxu0  ;;  %v2259_v36 = vpop.f32.mrb[8].mxu1  ;;  %1328 = vmatprep.mubr.bf16.mxu0 %v771_v25  ;;  %1368 = vmatprep.mubr.bf16.mxu1 %v773_v27 }
 0x2f5   :  { %v715_v51 = vpop.f32.mrb[21].mxu0  ;;  %v756_v37 = vpop.f32.mrb[9].mxu1  ;;  %1329 = vmatmul.mubr.bf16.vlgmr.msra.gmra.mrb[24].mxu0 %v770_v30  ;;  %1369 = vmatmul.mubr.bf16.vlgmr.msra.gmra.mrb[12].mxu1 %v772_v31  ;;  %v714_v9 = vadd.f32 %v2257_v34, %v493_v4  ;;  %v755_v11 = vadd.f32 %v2259_v36, %v501_v5 }
 0x2f6   :  { %v716_v39 = vadd.f32 %v715_v51, %v497_v42  ;;  %v757_v54 = vadd.f32 %v756_v37, %v505_v18  ;;  %1652 = vmatpush3.bf16.msra.mxu0 %v1822_v28  ;;  %1674 = vmatpush3.bf16.msra.mxu1 %v1823_v29  ;;  %v717_v41 = vpop.f32.mrb[22].mxu0  ;;  %v758_v43 = vpop.f32.mrb[10].mxu1 }
 0x2f7   :  { %v718_v57 = vpop.f32.mrb[23].mxu0  ;;  %v759_v46 = vpop.f32.mrb[11].mxu1  ;;  %1653 = vmatprep.subr.bf16.mxu0 %v1824_v32  ;;  %1675 = vmatprep.subr.bf16.mxu1 %v1825_v33  ;;  %v765_v15 = vmax.f32 %v714_v9, 0.0  ;;  %v767_v38 = vmax.f32 %v755_v11, 0.0 }
 0x2f8   :  { %v766_v20 = vmax.f32 %v716_v39, 0.0  ;;  %v768_v48 = vmax.f32 %v757_v54, 0.0 }
 0x2f9   :  { %v774_v17 = vpack.c.bf16 %v765_v15, %v765_v15  ;;  %v776_v19 = vpack.c.bf16 %v767_v38, %v767_v38 }
 0x2fa   :  { %v775_v49 = vpack.c.bf16 %v766_v20, %v766_v20  ;;  %v777_v10 = vpack.c.bf16 %v768_v48, %v768_v48  ;;  %1654 = vmatpush3.bf16.msra.mxu0 %v1826_v44  ;;  %1676 = vmatpush3.bf16.msra.mxu1 %v1827_v45 }
 0x2fb   :  { %1655 = vmatprep.subr.bf16.mxu0 %v1828_v61  ;;  %1677 = vmatprep.subr.bf16.mxu1 %v1829_v47 }
 0x2fc   :  { %1408 = vmatprep.mubr.bf16.mxu0 %v775_v49  ;;  %1448 = vmatprep.mubr.bf16.mxu1 %v777_v10 }
 0x2fe   :  { %1656 = vmatpush3.bf16.msra.mxu0 %v1830_v50  ;;  %1678 = vmatpush3.bf16.msra.mxu1 %v1831_v22 }
 0x2ff   :  { %1657 = vmatprep.subr.bf16.mxu0 %v1832_v52  ;;  %1679 = vmatprep.subr.bf16.mxu1 %v1833_v53 }
 0x302   :  { %1658 = vmatpush3.bf16.msra.mxu0 %v1834_v55  ;;  %1680 = vmatpush3.bf16.msra.mxu1 %v1835_v56 }
 0x303   :  { %1659 = vmatprep.subr.bf16.mxu0 %v1836_v24  ;;  %1681 = vmatprep.subr.bf16.mxu1 %v1837_v58 }
 0x306   :  { %1660 = vmatpush3.bf16.msra.mxu0 %v1838_v59  ;;  %1682 = vmatpush3.bf16.msra.mxu1 %v1839_v60 }
 0x307   :  { %1661 = vmatprep.subr.bf16.mxu0 %v1840_v1  ;;  %1683 = vmatprep.subr.bf16.mxu1 %v1841_v2 }
 0x30a   :  { %1662 = vmatpush3.bf16.msra.mxu0 %v1842_v3  ;;  %1684 = vmatpush3.bf16.msra.mxu1 %v1843_v26 }
 0x30b   :  { %1663 = vmatprep.subr.bf16.mxu0 %v1844_v6  ;;  %1685 = vmatprep.subr.bf16.mxu1 %v1845_v7 }
 0x30e   :  { %1664 = vmatpush3.bf16.msra.mxu0 %v1846_v8  ;;  %1686 = vmatpush3.bf16.msra.mxu1 %v1847_v62 }
 0x30f   :  { %1665 = vmatprep.subr.bf16.mxu0 %v1848_v12  ;;  %1687 = vmatprep.subr.bf16.mxu1 %v1849_v13 }
 0x312   :  { %1666 = vmatpush3.bf16.msra.mxu0 %v1850_v35  ;;  %1688 = vmatpush3.bf16.msra.mxu1 %v1851_v14 }
 0x315   :  { %1409 = vmatmul.mubr.bf16.vlgmr.msra.gmra.mrb[28].mxu0 %v774_v17  ;;  %1449 = vmatmul.mubr.bf16.vlgmr.msra.gmra.mrb[16].mxu1 %v776_v19 }
 0x3c8   :  { %v1623_v21 = vpop.f32.mrb[24].mxu0  ;;  %v1645_v16 = vpop.f32.mrb[12].mxu1 }
 0x3c9   :  { %v1624_v40 = vpop.f32.mrb[25].mxu0  ;;  %v1646_v25 = vpop.f32.mrb[13].mxu1 }
 0x3ca   :  { %v1625_v27 = vadd.f32 %v1624_v40, %v1623_v21  ;;  %v1647_v42 = vadd.f32 %v1646_v25, %v1645_v16  ;;  %v1626_v18 = vpop.f32.mrb[26].mxu0  ;;  %v1648_v28 = vpop.f32.mrb[14].mxu1 }
 0x3cb   :  { %v1627_v29 = vpop.f32.mrb[27].mxu0  ;;  %v1649_v30 = vpop.f32.mrb[15].mxu1 }
 0x3cc   :  { %v1331_v31 = vadd.f32 %v1625_v27, %v1515_v23 }
 0x3ce   :  { %v1371_v32 = vadd.f32 %v1647_v42, %v1331_v31 }
 0x3e8   :  { %v1667_v33 = vpop.f32.mrb[28].mxu0  ;;  %v1689_v34 = vpop.f32.mrb[16].mxu1 }
 0x3e9   :  { %v1668_v36 = vpop.f32.mrb[29].mxu0  ;;  %v1690_v51 = vpop.f32.mrb[17].mxu1 }
 0x3ea   :  { %v1669_v37 = vadd.f32 %v1668_v36, %v1667_v33  ;;  %v1691_v39 = vadd.f32 %v1690_v51, %v1689_v34  ;;  %v1670_v54 = vpop.f32.mrb[30].mxu0  ;;  %v1692_v41 = vpop.f32.mrb[18].mxu1 }
 0x3eb   :  { %v1671_v43 = vpop.f32.mrb[31].mxu0  ;;  %v1693_v44 = vpop.f32.mrb[19].mxu1 }
 0x3ec   :  { %v1411_v45 = vadd.f32 %v1669_v37, %v1371_v32 }
 0x3ee   :  { %v1451_v57 = vadd.f32 %v1691_v39, %v1411_v45 }
 0x3f0   :  { %1456 = vst [vmem:[%s2357_s6] sm:$0xff] %v1451_v57 }

</bundles_post_ra>
